<compile_context>
chip_gen: v6e
topology: v6e:2x2x1
jax: 0.10.0
libtpu: 0.0.40
codegen_flags: <defaults>
</compile_context>

<pallas_src>
import functools

import jax
import jax.numpy as jnp
from jax import lax
from jax.experimental import pallas as pl
from jax.experimental.pallas import tpu as pltpu


def _gap1d_single_kernel(x_ref, o_ref, *, inv_l):
    """Whole length axis in one tile. x_ref: (TB, C, L); o_ref: (TB, C)."""
    x = x_ref[...].astype(jnp.float32)
    o_ref[...] = (jnp.sum(x, axis=-1) * inv_l).astype(o_ref.dtype)


def _gap1d_reduce_kernel(x_ref, o_ref, acc_ref, *, inv_l, tl, true_l, mask_last):
    """L tiled as a grid reduction. x_ref: (TB, C, TL); acc_ref: (TB, C) f32."""
    k = pl.program_id(1)

    @pl.when(k == 0)
    def _():
        acc_ref[...] = jnp.zeros_like(acc_ref)

    x = x_ref[...]
    if mask_last:
        # The last L tile extends past the array: out-of-bounds lanes hold
        # unspecified data, so zero them before accumulating.  Cheap VPU work
        # hidden under the (dominant) input DMA; emitted only when L % TL != 0.
        lane = lax.broadcasted_iota(jnp.int32, x.shape, dimension=x.ndim - 1)
        x = jnp.where(k * tl + lane < true_l, x, jnp.zeros_like(x))
    acc_ref[...] += jnp.sum(x.astype(jnp.float32), axis=-1)

    @pl.when(k == pl.num_programs(1) - 1)
    def _():
        # Divide by the TRUE length (not the tile length) -> exact mean.
        o_ref[...] = (acc_ref[...] * inv_l).astype(o_ref.dtype)


def gap1d(x, *, block_budget_bytes: int = 4 * 1024 * 1024):
    """Global average pool over the last axis + flatten: (B, C, L) -> (B, C)."""
    B, C, L = x.shape
    out_dtype = x.dtype
    itemsize = jnp.dtype(x.dtype).itemsize
    inv_l = 1.0 / L

    # Batch tile: full B when small, otherwise >= 8 sublanes (keeps the
    # (TB, C) output block 8-aligned; required when TB != B).
    TB = B if B <= 8 else 8

    if TB * C * L * itemsize <= block_budget_bytes:
        # ---- single-tile path: whole L in one block ----
        if B > 8:
            # Grow the batch block (stays a multiple of 8) to amortize the
            # per-grid-step overhead while the slab still fits the budget.
            while TB * 2 <= B and TB * 2 * C * L * itemsize <= block_budget_bytes:
                TB *= 2
        TL = L
        grid = (pl.cdiv(B, TB),)
        kernel = functools.partial(_gap1d_single_kernel, inv_l=inv_l)
        in_specs = [pl.BlockSpec((TB, C, L), lambda i: (i, 0, 0))]
        out_specs = pl.BlockSpec((TB, C), lambda i: (i, 0))
        scratch = []
        dims = ("parallel",)
    else:
        # ---- tiled-L reduction path ----
        per_len_bytes = TB * C * itemsize
        TL = max(128, (block_budget_bytes // max(per_len_bytes, 1)) // 128 * 128)
        # NOTE: for extremely large C (TB*C*128*itemsize > budget) the tile can
        # exceed the budget; vmem_limit_bytes below is raised automatically.
        n_l = pl.cdiv(L, TL)
        mask_last = (L % TL) != 0
        grid = (pl.cdiv(B, TB), n_l)
        kernel = functools.partial(
            _gap1d_reduce_kernel, inv_l=inv_l, tl=TL, true_l=L, mask_last=mask_last
        )
        in_specs = [pl.BlockSpec((TB, C, TL), lambda i, k: (i, 0, k))]
        out_specs = pl.BlockSpec((TB, C), lambda i, k: (i, 0))
        scratch = [pltpu.VMEM((TB, C), jnp.float32)]
        dims = ("parallel", "arbitrary")

    # Raise the scoped-VMEM limit only if the (double-buffered) tiles need it.
    est_bytes = (
        2 * TB * C * TL * itemsize                      # double-buffered input
        + 2 * TB * C * jnp.dtype(out_dtype).itemsize    # double-buffered output
        + TB * C * 4                                    # f32 accumulator
    )
    vmem_limit = int(est_bytes + (4 << 20)) if est_bytes > (12 << 20) else None

    return pl.pallas_call(
        kernel,
        out_shape=jax.ShapeDtypeStruct((B, C), out_dtype),
        grid_spec=pltpu.PrefetchScalarGridSpec(
            num_scalar_prefetch=0,
            grid=grid,
            in_specs=in_specs,
            out_specs=out_specs,
            scratch_shapes=scratch,
        ),
        compiler_params=pltpu.CompilerParams(
            dimension_semantics=dims,
            vmem_limit_bytes=vmem_limit,
        ),
    )(x)


if __name__ == "__main__":
    # GAP1d has no learnable parameters; nothing to initialize.
    key = jax.random.PRNGKey(0)
    k1, k2, k3 = jax.random.split(key, 3)

    # Small shape consistent with the module: (batch=2, channels=4, length=16).
    B, C, L = 2, 4, 16
    x = jax.random.normal(k1, (B, C, L), dtype=jnp.float32)
    out = jax.block_until_ready(gap1d(x))
    ref = jnp.mean(x, axis=-1)
    assert out.shape == (B, C), out.shape
    assert jnp.allclose(out, ref, atol=1e-6, rtol=1e-6), "small-shape mismatch"

    # Batch-blocked single-L-tile path with a ragged batch block.
    B2, C2, L2 = 10, 16, 8000
    x2 = jax.random.normal(k2, (B2, C2, L2), dtype=jnp.float32)
    out2 = jax.block_until_ready(gap1d(x2))
    ref2 = jnp.mean(x2, axis=-1)
    assert out2.shape == (B2, C2), out2.shape
    assert jnp.allclose(out2, ref2, atol=1e-5, rtol=1e-5), "single-path mismatch"

    # Forced tiled-L accumulator path with a ragged (masked) last L tile.
    B3, C3, L3 = 10, 16, 1000
    x3 = jax.random.normal(k3, (B3, C3, L3), dtype=jnp.float32)
    out3 = jax.block_until_ready(gap1d(x3, block_budget_bytes=256 * 1024))
    ref3 = jnp.mean(x3, axis=-1)
    assert out3.shape == (B3, C3), out3.shape
    assert jnp.allclose(out3, ref3, atol=1e-5, rtol=1e-5), "tiled-path mismatch"

    print("KERNEL_OK")
</pallas_src>

<mosaic_0001>
module attributes {stable_mosaic.version = 11 : i64} {
  func.func @_gap1d_single_kernel(%arg0: i32, %arg1: memref<2x4x16xf32, #tpu.memory_space<vmem>>, %arg2: memref<2x4xf32, #tpu.memory_space<vmem>>) attributes {dimension_semantics = [#tpu.dimension_semantics<parallel>], iteration_bounds = array<i64: 1>, scalar_prefetch = 0 : i64, scratch_operands = 0 : i64, tpu.core_type = #tpu.core_type<tc>, window_params = [{transform_indices = @transform_0, window_bounds = array<i64: 2, 4, 16>}, {transform_indices = @transform_1, window_bounds = array<i64: 2, 4>}]} {
    %c0 = arith.constant 0 : index
    %c0_0 = arith.constant 0 : index
    %c0_1 = arith.constant 0 : index
    %0 = vector.load %arg1[%c0, %c0_0, %c0_1] : memref<2x4x16xf32, #tpu.memory_space<vmem>>, vector<2x4x16xf32>
    %cst = arith.constant dense<0.000000e+00> : vector<2x4xf32>
    %1 = vector.multi_reduction <add>, %0, %cst [2] : vector<2x4x16xf32> to vector<2x4xf32>
    %cst_2 = arith.constant 6.250000e-02 : f32
    %2 = vector.broadcast %cst_2 : f32 to vector<2x4xf32>
    %3 = arith.mulf %1, %2 : vector<2x4xf32>
    %c0_3 = arith.constant 0 : index
    %c0_4 = arith.constant 0 : index
    %4 = vector.load %arg2[%c0_3, %c0_4] : memref<2x4xf32, #tpu.memory_space<vmem>>, vector<2x4xf32>
    tpu.vector_store %arg2[%c0_3, %c0_4], %3 {strides = array<i32>} : memref<2x4xf32, #tpu.memory_space<vmem>>, vector<2x4xf32>,
    return
  }
  func.func @transform_0(%arg0: i32) -> (i32, i32, i32) {
    %c0_i32 = arith.constant 0 : i32
    %c0_i32_0 = arith.constant 0 : i32
    %c0_i32_1 = arith.constant 0 : i32
    return %arg0, %c0_i32, %c0_i32_0 : i32, i32, i32
  }
  func.func @transform_1(%arg0: i32) -> (i32, i32) {
    %c0_i32 = arith.constant 0 : i32
    %c0_i32_0 = arith.constant 0 : i32
    return %arg0, %c0_i32 : i32, i32
  }
}

</mosaic_0001>

<bundles_post_ra>
// kernel: tpu_custom_call.1
= control target key start
LH: loop header
LB: loop body
LE: loop exit
PB: predicated region body
PF: predicated region fallthrough
CT: control target
= control target key end

     0   :  { %6 = vsyncpa [#allocation3], 0  ;;  %s134_s0 = inlined_call_operand.hbm [shape: f32[2,4,16], index: 0, kind: input, shape index: {}]   ;;  %s135_s1 = inlined_call_operand.hbm [shape: f32[2,4], index: 1, kind: output, shape index: {}]  }
   0x1   :  { %7 = vsyncpa [#allocation4], 0  ;;  %s114_s6 = smov [#allocation2]  }
   0x2   :  { %s13_s7 = sshll.u32 %s114_s6, 4  ;;  %s14_s7 = int_to_ptr.vmem [resolvable:$true] %s13_s7 }
   0x3   :  { %s78_s8 = scalar_lea.vmem %s14_s7, 128  ;;  %p83_p1 = scmp.lt.s32.totalorder %s14_s7, %s14_s7 }
   0x4   :  { %p79_p0 = scmp.ne.s32.totalorder %s14_s7, %s78_s8  ;;  %p84_p2 = scmp.lt.s32.totalorder %s78_s8, %s78_s8 }
   0x6   :  { %p85_p3 = por %p84_p2, %p83_p1 }
   0x8   :  { %p86_p4 = pnand %p85_p3, %p79_p0 }
   0xa   :  { %89 = shalt.err (!%p86_p4)
}
   0xb   :  { %s115_s9 = smov 64   ;;  %s116_s10 = smov 4  }
   0xc   :  { %19 = dma.hbm_to_vmem [thread:$0]  %s134_s0, 128, %s14_s7, [#allocation3], %s115_s9, %s115_s9, %s116_s10  }
   0xd   :  { %110 = dma.done.wait [#allocation3], 128  }
   0xe   :  { %111 = vsyncadd [#allocation3], 4294967168  ;;  %vm25_vm0 = vcmask 125952   ;;  %v23_v0 = vld [vmem:[#allocation2] sm:$0xf]  ;;  %v36_v4 = vlaneseq  ;;  %s117_s13 = smov [#allocation5]  }
   0xf   :  { %v24_v1 = vld [vmem:[#allocation2 + $0x4] sm:$0xf]  ;;  %v26_v2 = vsel %vm25_vm0, %v23_v0, 0.0  ;;  %s57_s14 = sshll.u32 %s117_s13, 4  ;;  %vm46_vm1 = vcmask 1041409   ;;  %vm49_vm2 = vcmask 25600   ;;  %s58_s14 = int_to_ptr.vmem [resolvable:$true] %s57_s14 }
  0x10   :  { %27 = vadd.xlane.f32.xlu0 %v26_v2  ;;  %v29_v3 = vsel %vm25_vm0, %v24_v1, 0.0  ;;  %v37_v5 = vand.u32 127, %v36_v4  ;;  %v39_v6 = vshrl.u32 %v36_v4, 7  ;;  %s90_s0 = scalar_lea.vmem %s58_s14, 32  ;;  %p95_p6 = scmp.lt.s32.totalorder %s58_s14, %s58_s14 }
  0x11   :  { %p91_p5 = scmp.ne.s32.totalorder %s58_s14, %s90_s0  ;;  %p96_p7 = scmp.lt.s32.totalorder %s90_s0, %s90_s0 }
  0x12   :  { %v40_v8 = vsub.s32 %v37_v5, %v39_v6 }
  0x13   :  { %p97_p8 = por %p96_p7, %p95_p6 }
  0x14   :  { %30 = vadd.xlane.f32.xlu0 %v29_v3 }
  0x15   :  { %p98_p9 = pnand %p97_p8, %p91_p5 }
  0x99   :  { %v28_v7 = vpop.xlane.xlu0 %27 }
  0x9a   :  { %v32_v9 = vmul.f32 0.0625, %v28_v7 }
  0x9c   :  { %v41_v12 = vrot.slane %v32_v9, %v40_v8 }
  0x9d   :  { %v31_v10 = vpop.xlane.xlu0 %30 }
  0x9e   :  { %v33_v11 = vmul.f32 0.0625, %v31_v10 }
  0xa0   :  { %v45_v13 = vrot.slane %v33_v11, %v40_v8 }
  0xa2   :  { %v47_v14 = vsel %vm46_vm1, %v45_v13, %v41_v12 }
  0xa3   :  { %50 = vst.msk [vmem:[#allocation5] sm:$0x3] %vm49_vm2, %v47_v14 }
  0xa4   :  { %101 = shalt.err (!%p98_p9)
}
  0xa5   :  { %60 = dma.vmem_to_hbm [thread:$0]  %s58_s14, 32, %s135_s1, [#allocation4]  }
  0xa6   :  { %112 = dma.done.wait [#allocation4], 32  }
  0xa7   :  { %113 = vsyncadd [#allocation4], 4294967264 }
  0xa8   :  { %64 = vsyncpa [#allocation3], 1 }
  0xa9   :  { %65 = vsyncpa [#allocation4], 1 }

</bundles_post_ra>
